<compile_context>
chip_gen: v7x
topology: tpu7x:2x2x1
jax: 0.10.0
libtpu: 0.0.40
codegen_flags: <defaults>
</compile_context>

<pallas_src>
import jax
import jax.numpy as jnp
from jax import lax
from jax.experimental import pallas as pl
from jax.experimental.pallas import tpu as pltpu


def _semantic_decoder_kernel(z_ref, w0_ref, w1_ref, b1_ref, w2_ref, b2_ref,
                             w3_ref, out_ref):
    # z_ref block: (1, Cin, L)  -> work on the (Cin, L) tile, time on lanes.
    x_in = z_ref[0].astype(jnp.float32)            # (Cin, L)
    L = x_in.shape[-1]

    # Hoisted boundary masks (computed once, reused by all 4 convs).
    col = lax.broadcasted_iota(jnp.int32, (1, L), 1)
    not_first = (col != 0).astype(jnp.float32)     # zero out l = 0 after +1 roll
    not_last = (col != L - 1).astype(jnp.float32)  # zero out l = L-1 after -1 roll

    def conv(x, w):
        # x: (C, L) f32, w: (Cout, 3*C) in compute dtype.
        # x_prev[:, l] = x[:, l-1] (zero-padded), x_next[:, l] = x[:, l+1].
        x_prev = pltpu.roll(x, shift=1, axis=1) * not_first
        x_next = pltpu.roll(x, shift=L - 1, axis=1) * not_last   # shift -1 == L-1
        x_cat = jnp.concatenate([x_prev, x, x_next], axis=0)     # (3*C, L) im2col
        return jnp.dot(w, x_cat.astype(w.dtype),
                       preferred_element_type=jnp.float32)       # (Cout, L) f32

    # initial_conv (no bias)
    x0 = conv(x_in, w0_ref[...])                   # (Cd, L)

    # residual_blocks: ReLU -> conv(+bias) -> ReLU -> conv(+bias), then +x0
    r = jnp.maximum(x0, 0.0)
    r = conv(r, w1_ref[...]) + b1_ref[...]
    r = jnp.maximum(r, 0.0)
    r = conv(r, w2_ref[...]) + b2_ref[...]
    x = r + x0

    # final_conv (no bias)
    y = conv(x, w3_ref[...])                       # (Cout, L)
    out_ref[0] = y.astype(out_ref.dtype)


def semantic_decoder_forward(z_ncl, params, compute_dtype=jnp.float32):
    """z_ncl: (B, code_dim, L) float32 -> (B, output_channels, L) float32.

    compute_dtype controls the MXU input dtype (use jnp.bfloat16 on v5e/v6e
    for the native fast path); accumulation stays float32.
    """
    w0, w1, b1, w2, b2, w3 = (params["w0"], params["w1"], params["b1"],
                              params["w2"], params["b2"], params["w3"])
    B, Cin, L = z_ncl.shape
    K, _, Cd = w0.shape
    Cout = w3.shape[-1]

    # Pre-pack each conv's taps into a single (Cout, K*Cin) matrix so the
    # in-kernel conv is one matmul with contraction depth K*Cin.
    def pack(w):  # (K, Ci, Co) -> (Co, K*Ci), tap order [-1, 0, +1]
        return jnp.concatenate([w[k] for k in range(w.shape[0])],
                               axis=0).T.astype(compute_dtype)

    w0p, w1p, w2p, w3p = pack(w0), pack(w1), pack(w2), pack(w3)
    b1c = b1.reshape(Cd, 1).astype(jnp.float32)    # broadcast over L in-kernel
    b2c = b2.reshape(Cd, 1).astype(jnp.float32)

    def full(arr):
        return pl.BlockSpec(arr.shape, lambda b, _n=arr.ndim: (0,) * _n)

    flops = 2 * B * L * K * (Cin * Cd + 2 * Cd * Cd + Cd * Cout)
    bytes_accessed = int(
        z_ncl.size * z_ncl.dtype.itemsize
        + B * Cout * L * 4
        + sum(int(a.size) * a.dtype.itemsize
              for a in (w0p, w1p, w2p, w3p, b1c, b2c)))

    out = pl.pallas_call(
        _semantic_decoder_kernel,
        out_shape=jax.ShapeDtypeStruct((B, Cout, L), jnp.float32),
        grid_spec=pltpu.PrefetchScalarGridSpec(
            num_scalar_prefetch=0,
            grid=(B,),
            in_specs=[
                pl.BlockSpec((1, Cin, L), lambda b: (b, 0, 0)),
                full(w0p), full(w1p), full(b1c),
                full(w2p), full(b2c), full(w3p),
            ],
            out_specs=pl.BlockSpec((1, Cout, L), lambda b: (b, 0, 0)),
        ),
        compiler_params=pltpu.CompilerParams(
            dimension_semantics=("parallel",)),
        cost_estimate=pl.CostEstimate(flops=int(flops), transcendentals=0,
                                      bytes_accessed=bytes_accessed),
    )(z_ncl, w0p, w1p, b1c, w2p, b2c, w3p)

    return out                                      # already (B, Cout, L)


def _reference_forward(z_ncl, params):
    """Pure-JAX reference (channels-last, explicit zero padding)."""
    w0, w1, b1, w2, b2, w3 = (params["w0"], params["w1"], params["b1"],
                              params["w2"], params["b2"], params["w3"])
    x = jnp.transpose(z_ncl, (0, 2, 1))             # (B, L, Cin)
    L = x.shape[1]

    def conv(h, w, b=None):
        hp = jnp.pad(h, ((0, 0), (1, 1), (0, 0)))
        out = sum(jnp.einsum("blc,cd->bld", hp[:, k:k + L, :], w[k])
                  for k in range(w.shape[0]))
        if b is not None:
            out = out + b
        return out

    x0 = conv(x, w0)
    r = jnp.maximum(x0, 0.0)
    r = conv(r, w1, b1)
    r = jnp.maximum(r, 0.0)
    r = conv(r, w2, b2)
    y = conv(r + x0, w3)
    return jnp.transpose(y, (0, 2, 1))


def init_params(key, code_dim, output_channels, decode_channels, kernel_size=3):
    """Deterministic synthetic params; weights stored as (K, Cin, Cout)."""
    ks = jax.random.split(key, 6)
    s = 0.05
    return {
        "w0": s * jax.random.normal(ks[0], (kernel_size, code_dim, decode_channels), jnp.float32),
        "w1": s * jax.random.normal(ks[1], (kernel_size, decode_channels, decode_channels), jnp.float32),
        "b1": s * jax.random.normal(ks[2], (decode_channels,), jnp.float32),
        "w2": s * jax.random.normal(ks[3], (kernel_size, decode_channels, decode_channels), jnp.float32),
        "b2": s * jax.random.normal(ks[4], (decode_channels,), jnp.float32),
        "w3": s * jax.random.normal(ks[5], (kernel_size, decode_channels, output_channels), jnp.float32),
    }


if __name__ == "__main__":
    B, code_dim, decode_channels, output_channels, L = 2, 16, 32, 8, 16

    key = jax.random.PRNGKey(0)
    k_z, k_p = jax.random.split(key)
    z = jax.random.normal(k_z, (B, code_dim, L), jnp.float32)   # PyTorch (B, C, L)
    params = init_params(k_p, code_dim, output_channels, decode_channels)

    ref = _reference_forward(z, params)

    # f32 MXU path: tight tolerance vs the f32 reference.
    out = jax.block_until_ready(semantic_decoder_forward(z, params))
    assert out.shape == (B, output_channels, L)
    assert jnp.allclose(out, ref, atol=1e-4, rtol=1e-4), "f32 kernel mismatch vs reference"

    # bf16-input MXU path (v5e/v6e fast path), f32 accumulation: looser check.
    out_bf16 = jax.block_until_ready(
        semantic_decoder_forward(z, params, compute_dtype=jnp.bfloat16))
    assert bool(jnp.isfinite(out_bf16).all())
    rel = float(jnp.max(jnp.abs(out_bf16 - ref)) / (jnp.max(jnp.abs(ref)) + 1e-8))
    assert rel < 1e-1, f"bf16 kernel relative error too large: {rel}"

    print("KERNEL_OK")
</pallas_src>

<mosaic_0001>
module attributes {stable_mosaic.version = 11 : i64} {
  func.func @_semantic_decoder_kernel(%arg0: i32, %arg1: memref<1x16x16xf32, #tpu.memory_space<vmem>>, %arg2: memref<32x48xf32, #tpu.memory_space<vmem>>, %arg3: memref<32x96xf32, #tpu.memory_space<vmem>>, %arg4: memref<32x1xf32, #tpu.memory_space<vmem>>, %arg5: memref<32x96xf32, #tpu.memory_space<vmem>>, %arg6: memref<32x1xf32, #tpu.memory_space<vmem>>, %arg7: memref<8x96xf32, #tpu.memory_space<vmem>>, %arg8: memref<1x8x16xf32, #tpu.memory_space<vmem>>) attributes {dimension_semantics = [#tpu.dimension_semantics<parallel>], iteration_bounds = array<i64: 2>, scalar_prefetch = 0 : i64, scratch_operands = 0 : i64, tpu.core_type = #tpu.core_type<tc>, window_params = [{transform_indices = @transform_0, window_bounds = array<i64: 1, 16, 16>}, {pipeline_mode = #tpu.pipeline_mode<synchronous>, transform_indices = @transform_1, window_bounds = array<i64: 32, 48>}, {pipeline_mode = #tpu.pipeline_mode<synchronous>, transform_indices = @transform_2, window_bounds = array<i64: 32, 96>}, {pipeline_mode = #tpu.pipeline_mode<synchronous>, transform_indices = @transform_3, window_bounds = array<i64: 32, 1>}, {pipeline_mode = #tpu.pipeline_mode<synchronous>, transform_indices = @transform_4, window_bounds = array<i64: 32, 96>}, {pipeline_mode = #tpu.pipeline_mode<synchronous>, transform_indices = @transform_5, window_bounds = array<i64: 32, 1>}, {pipeline_mode = #tpu.pipeline_mode<synchronous>, transform_indices = @transform_6, window_bounds = array<i64: 8, 96>}, {transform_indices = @transform_7, window_bounds = array<i64: 1, 8, 16>}]} {
    %c0 = arith.constant 0 : index
    %c0_0 = arith.constant 0 : index
    %c0_1 = arith.constant 0 : index
    %0 = vector.load %arg1[%c0, %c0_0, %c0_1] : memref<1x16x16xf32, #tpu.memory_space<vmem>>, vector<1x16x16xf32>
    %1 = vector.shape_cast %0 : vector<1x16x16xf32> to vector<16x16xf32>
    %2 = tpu.iota {dimensions = array<i32: 1>} : vector<1x16xi32>
    %c0_i32 = arith.constant 0 : i32
    %3 = vector.broadcast %c0_i32 : i32 to vector<1x16xi32>
    %4 = arith.cmpi ne, %2, %3 : vector<1x16xi32>
    %5 = arith.extui %4 : vector<1x16xi1> to vector<1x16xi32>
    %6 = arith.sitofp %5 : vector<1x16xi32> to vector<1x16xf32>
    %c15_i32 = arith.constant 15 : i32
    %7 = vector.broadcast %c15_i32 : i32 to vector<1x16xi32>
    %8 = arith.cmpi ne, %2, %7 : vector<1x16xi32>
    %9 = arith.extui %8 : vector<1x16xi1> to vector<1x16xi32>
    %10 = arith.sitofp %9 : vector<1x16xi32> to vector<1x16xf32>
    %c0_2 = arith.constant 0 : index
    %c0_3 = arith.constant 0 : index
    %11 = vector.load %arg2[%c0_2, %c0_3] : memref<32x48xf32, #tpu.memory_space<vmem>>, vector<32x48xf32>
    %c1_i32 = arith.constant 1 : i32
    %12 = tpu.dynamic_rotate %1 by %c1_i32 dim 1 : vector<16x16xf32>, i32 -> vector<16x16xf32>
    %13 = vector.broadcast %6 : vector<1x16xf32> to vector<16x16xf32>
    %14 = arith.mulf %12, %13 : vector<16x16xf32>
    %c15_i32_4 = arith.constant 15 : i32
    %15 = tpu.dynamic_rotate %1 by %c15_i32_4 dim 1 : vector<16x16xf32>, i32 -> vector<16x16xf32>
    %16 = vector.broadcast %10 : vector<1x16xf32> to vector<16x16xf32>
    %17 = arith.mulf %15, %16 : vector<16x16xf32>
    %18 = tpu.concatenate %14, %1, %17 in 0 : vector<16x16xf32>, vector<16x16xf32>, vector<16x16xf32> -> vector<48x16xf32>
    %cst = arith.constant dense<0.000000e+00> : vector<32x16xf32>
    %19 = tpu.matmul %11, %18, %cst {dimension_numbers = #tpu.dot_dimension_numbers<[1], [0], [0], [1], [0, 0, 1, 1], [], []>} : vector<32x48xf32>, vector<48x16xf32>, vector<32x16xf32> -> vector<32x16xf32>
    %cst_5 = arith.constant 0.000000e+00 : f32
    %20 = vector.broadcast %cst_5 : f32 to vector<32x16xf32>
    %21 = arith.maximumf %19, %20 : vector<32x16xf32>
    %c0_6 = arith.constant 0 : index
    %c0_7 = arith.constant 0 : index
    %22 = vector.load %arg3[%c0_6, %c0_7] : memref<32x96xf32, #tpu.memory_space<vmem>>, vector<32x96xf32>
    %c1_i32_8 = arith.constant 1 : i32
    %23 = tpu.dynamic_rotate %21 by %c1_i32_8 dim 1 : vector<32x16xf32>, i32 -> vector<32x16xf32>
    %24 = vector.broadcast %6 : vector<1x16xf32> to vector<32x16xf32>
    %25 = arith.mulf %23, %24 : vector<32x16xf32>
    %c15_i32_9 = arith.constant 15 : i32
    %26 = tpu.dynamic_rotate %21 by %c15_i32_9 dim 1 : vector<32x16xf32>, i32 -> vector<32x16xf32>
    %27 = vector.broadcast %10 : vector<1x16xf32> to vector<32x16xf32>
    %28 = arith.mulf %26, %27 : vector<32x16xf32>
    %29 = tpu.concatenate %25, %21, %28 in 0 : vector<32x16xf32>, vector<32x16xf32>, vector<32x16xf32> -> vector<96x16xf32>
    %cst_10 = arith.constant dense<0.000000e+00> : vector<32x16xf32>
    %30 = tpu.matmul %22, %29, %cst_10 {dimension_numbers = #tpu.dot_dimension_numbers<[1], [0], [0], [1], [0, 0, 1, 1], [], []>} : vector<32x96xf32>, vector<96x16xf32>, vector<32x16xf32> -> vector<32x16xf32>
    %c0_11 = arith.constant 0 : index
    %c0_12 = arith.constant 0 : index
    %31 = vector.load %arg4[%c0_11, %c0_12] : memref<32x1xf32, #tpu.memory_space<vmem>>, vector<32x1xf32>
    %32 = vector.broadcast %31 : vector<32x1xf32> to vector<32x16xf32>
    %33 = arith.addf %30, %32 : vector<32x16xf32>
    %cst_13 = arith.constant 0.000000e+00 : f32
    %34 = vector.broadcast %cst_13 : f32 to vector<32x16xf32>
    %35 = arith.maximumf %33, %34 : vector<32x16xf32>
    %c0_14 = arith.constant 0 : index
    %c0_15 = arith.constant 0 : index
    %36 = vector.load %arg5[%c0_14, %c0_15] : memref<32x96xf32, #tpu.memory_space<vmem>>, vector<32x96xf32>
    %c1_i32_16 = arith.constant 1 : i32
    %37 = tpu.dynamic_rotate %35 by %c1_i32_16 dim 1 : vector<32x16xf32>, i32 -> vector<32x16xf32>
    %38 = vector.broadcast %6 : vector<1x16xf32> to vector<32x16xf32>
    %39 = arith.mulf %37, %38 : vector<32x16xf32>
    %c15_i32_17 = arith.constant 15 : i32
    %40 = tpu.dynamic_rotate %35 by %c15_i32_17 dim 1 : vector<32x16xf32>, i32 -> vector<32x16xf32>
    %41 = vector.broadcast %10 : vector<1x16xf32> to vector<32x16xf32>
    %42 = arith.mulf %40, %41 : vector<32x16xf32>
    %43 = tpu.concatenate %39, %35, %42 in 0 : vector<32x16xf32>, vector<32x16xf32>, vector<32x16xf32> -> vector<96x16xf32>
    %cst_18 = arith.constant dense<0.000000e+00> : vector<32x16xf32>
    %44 = tpu.matmul %36, %43, %cst_18 {dimension_numbers = #tpu.dot_dimension_numbers<[1], [0], [0], [1], [0, 0, 1, 1], [], []>} : vector<32x96xf32>, vector<96x16xf32>, vector<32x16xf32> -> vector<32x16xf32>
    %c0_19 = arith.constant 0 : index
    %c0_20 = arith.constant 0 : index
    %45 = vector.load %arg6[%c0_19, %c0_20] : memref<32x1xf32, #tpu.memory_space<vmem>>, vector<32x1xf32>
    %46 = vector.broadcast %45 : vector<32x1xf32> to vector<32x16xf32>
    %47 = arith.addf %44, %46 : vector<32x16xf32>
    %48 = arith.addf %47, %19 : vector<32x16xf32>
    %c0_21 = arith.constant 0 : index
    %c0_22 = arith.constant 0 : index
    %49 = vector.load %arg7[%c0_21, %c0_22] : memref<8x96xf32, #tpu.memory_space<vmem>>, vector<8x96xf32>
    %c1_i32_23 = arith.constant 1 : i32
    %50 = tpu.dynamic_rotate %48 by %c1_i32_23 dim 1 : vector<32x16xf32>, i32 -> vector<32x16xf32>
    %51 = vector.broadcast %6 : vector<1x16xf32> to vector<32x16xf32>
    %52 = arith.mulf %50, %51 : vector<32x16xf32>
    %c15_i32_24 = arith.constant 15 : i32
    %53 = tpu.dynamic_rotate %48 by %c15_i32_24 dim 1 : vector<32x16xf32>, i32 -> vector<32x16xf32>
    %54 = vector.broadcast %10 : vector<1x16xf32> to vector<32x16xf32>
    %55 = arith.mulf %53, %54 : vector<32x16xf32>
    %56 = tpu.concatenate %52, %48, %55 in 0 : vector<32x16xf32>, vector<32x16xf32>, vector<32x16xf32> -> vector<96x16xf32>
    %cst_25 = arith.constant dense<0.000000e+00> : vector<8x16xf32>
    %57 = tpu.matmul %49, %56, %cst_25 {dimension_numbers = #tpu.dot_dimension_numbers<[1], [0], [0], [1], [0, 0, 1, 1], [], []>} : vector<8x96xf32>, vector<96x16xf32>, vector<8x16xf32> -> vector<8x16xf32>
    %c0_26 = arith.constant 0 : index
    %c0_27 = arith.constant 0 : index
    %c0_28 = arith.constant 0 : index
    %58 = vector.load %arg8[%c0_26, %c0_27, %c0_28] : memref<1x8x16xf32, #tpu.memory_space<vmem>>, vector<1x8x16xf32>
    %59 = vector.shape_cast %58 : vector<1x8x16xf32> to vector<8x16xf32>
    %60 = vector.shape_cast %57 : vector<8x16xf32> to vector<1x8x16xf32>
    tpu.vector_store %arg8[%c0_26, %c0_27, %c0_28], %60 {strides = array<i32>} : memref<1x8x16xf32, #tpu.memory_space<vmem>>, vector<1x8x16xf32>,
    return
  }
  func.func @transform_0(%arg0: i32) -> (i32, i32, i32) {
    %c0_i32 = arith.constant 0 : i32
    %c0_i32_0 = arith.constant 0 : i32
    %c0_i32_1 = arith.constant 0 : i32
    return %arg0, %c0_i32, %c0_i32_0 : i32, i32, i32
  }
  func.func @transform_1(%arg0: i32) -> (i32, i32) {
    %c0_i32 = arith.constant 0 : i32
    %c0_i32_0 = arith.constant 0 : i32
    %c0_i32_1 = arith.constant 0 : i32
    return %c0_i32, %c0_i32_0 : i32, i32
  }
  func.func @transform_2(%arg0: i32) -> (i32, i32) {
    %c0_i32 = arith.constant 0 : i32
    %c0_i32_0 = arith.constant 0 : i32
    %c0_i32_1 = arith.constant 0 : i32
    return %c0_i32, %c0_i32_0 : i32, i32
  }
  func.func @transform_3(%arg0: i32) -> (i32, i32) {
    %c0_i32 = arith.constant 0 : i32
    %c0_i32_0 = arith.constant 0 : i32
    %c0_i32_1 = arith.constant 0 : i32
    return %c0_i32, %c0_i32_0 : i32, i32
  }
  func.func @transform_4(%arg0: i32) -> (i32, i32) {
    %c0_i32 = arith.constant 0 : i32
    %c0_i32_0 = arith.constant 0 : i32
    %c0_i32_1 = arith.constant 0 : i32
    return %c0_i32, %c0_i32_0 : i32, i32
  }
  func.func @transform_5(%arg0: i32) -> (i32, i32) {
    %c0_i32 = arith.constant 0 : i32
    %c0_i32_0 = arith.constant 0 : i32
    %c0_i32_1 = arith.constant 0 : i32
    return %c0_i32, %c0_i32_0 : i32, i32
  }
  func.func @transform_6(%arg0: i32) -> (i32, i32) {
    %c0_i32 = arith.constant 0 : i32
    %c0_i32_0 = arith.constant 0 : i32
    %c0_i32_1 = arith.constant 0 : i32
    return %c0_i32, %c0_i32_0 : i32, i32
  }
  func.func @transform_7(%arg0: i32) -> (i32, i32, i32) {
    %c0_i32 = arith.constant 0 : i32
    %c0_i32_0 = arith.constant 0 : i32
    %c0_i32_1 = arith.constant 0 : i32
    return %arg0, %c0_i32, %c0_i32_0 : i32, i32, i32
  }
}

</mosaic_0001>

<bundles_post_ra>
// kernel: tpu_custom_call.1
= control target key start
LH: loop header
LB: loop body
LE: loop exit
PB: predicated region body
PF: predicated region fallthrough
CT: control target
= control target key end

     0   :  { %12 = vsyncpa [#allocation3], 0  ;;  %s2270_s0 = inlined_call_operand.vmem [shape: f32[2,16,16], index: 0, kind: input, shape index: {}]   ;;  %s2271_s1 = inlined_call_operand.vmem [shape: f32[32,48], index: 1, kind: input, shape index: {}]   ;;  %s2272_s2 = inlined_call_operand.hbm [shape: f32[32,96], index: 2, kind: input, shape index: {}]   ;;  %s2273_s3 = inlined_call_operand.vmem [shape: f32[32,1], index: 3, kind: input, shape index: {}]   ;;  %s2274_s4 = inlined_call_operand.hbm [shape: f32[32,96], index: 4, kind: input, shape index: {}]   ;;  %s2275_s5 = inlined_call_operand.vmem [shape: f32[32,1], index: 5, kind: input, shape index: {}]   ;;  %s2276_s6 = inlined_call_operand.vmem [shape: f32[8,96], index: 6, kind: input, shape index: {}]   ;;  %s2277_s7 = inlined_call_operand.hbm [shape: f32[2,8,16], index: 7, kind: output, shape index: {}]  }
   0x1   :  { %13 = vsyncpa [#allocation6], 0 }
   0x2   :  { %14 = vsyncpa [#allocation4], 0 }
   0x3   :  { %16 = vsyncpa [#allocation4 + $0x1], 0  ;;  %s1897_s24 = smov 0   ;;  %s1899_s25 = smov 0  }
   0x4   :  { %s1901_s26 = smov 0   ;;  %s1903_s27 = smov 0  }
   0x5 LB: > { %s1918_s28 = sadd.s32 4294967295, %s1841_s27   ;;  %s1198_s29 = sadd.s32 4294967294, %s1841_s27   ;;  %s1841_s27 = sphi %s1903_s27, %s2297_s27   ;;  %s1837_s26 = sphi %s1901_s26, %s2296_s26   ;;  %s1833_s25 = sphi %s1899_s25, %s2295_s25   ;;  %s1829_s24 = sphi %s1897_s24, %s2294_s24  }
   0x6   : > { %s1922_s30 = sadd.s32 1, %s1841_s27   ;;  %s181_s8 = sadd.s32 1, %s1837_s26 }
   0x7   : > { %s178_s9 = ssub.s32 %s1841_s27, %s1922_s30  ;;  %p191_p0 = scmp.ne.s32.totalorder %s1837_s26, %s1833_s25 }
   0x8   : > { %p179_p1 = scmp.eq.s32.totalorder %s178_s9, 0  ;;  %p192_p2 = scmp.eq.s32.totalorder %s1918_s28, 1 }
   0x9   : > { %p197_p3 = scmp.ne.s32.totalorder %s1833_s25, %s1829_s24  ;;  %p198_p4 = scmp.eq.s32.totalorder %s1198_s29, 1 }
   0xa   : > { %s1933_s10 = scalar_select %p179_p1, %s1837_s26, %s181_s8  }
   0xb   : > { %p1935_p5 = por %p192_p2, %p191_p0  ;;  %p1939_p6 = por %p198_p4, %p197_p3 }
   0xc   : > { %2281 = sst [smem:[#allocation11_spill]] %s1933_s10  ;;  %p1199_p7 = scmp.ge.s32.totalorder %s1841_s27, 1 }
   0xd   : > { %s2282_s11 = scalar_select %p1935_p5, 1, 0 }
   0xe   : > { %s2283_s12 = scalar_select %p1939_p6, 1, 0 }
   0xf   : > { %p205_p8 = scmp.lt.s32.totalorder %s1841_s27, 3  ;;  %p2278_p9 = scmp.eq.s32.totalorder %s1918_s28, 0 }
  0x10   : > { %s1843_s14 = smov [#allocation2]   ;;  %s1844_s17 = smov [#allocation5]  }
  0x11   : > { %p1946_p10 = pnand %p1199_p7, %p205_p8  ;;  %s220_s15 = sshll.u32 %s1843_s14, 4  ;;  %s221_s15 = int_to_ptr.vmem [resolvable:$true] %s220_s15 }
  0x12   : > { %s236_s18 = sshll.u32 %s1844_s17, 4  ;;  %s1715_s21 = scalar_lea.hbm %s2272_s2, 512  ;;  %s1958_s18 = int_to_ptr.vmem [resolvable:$true] %s236_s18 }
  0x13   : > { %s2284_s13 = scalar_select %p1946_p10, 1, 0 }
  0x14   : > { %p1477_p11 = pneg %p1946_p10  ;;  %p1716_p13 = scmp.ne.s32.totalorder %s2272_s2, %s1715_s21 }
  0x15   : > { %p1722_p3 = scmp.lt.u32.totalorder %s1715_s21, %s2272_s2 }
  0x16   : > { %p1954_p12 = pnand %p2278_p9, %p1477_p11 }
  0x18   : > { %p1717_p0 = pneg %p1954_p12 }
  0x1a   : > { %p1718_p1 = pnand %p1717_p0, %p1716_p13 }
  0x1c   : > { %p1719_p2 = pneg %p1718_p1 }
  0x1e   : > { %p1724_p4 = pnand %p1722_p3, %p1719_p2 }
  0x20   : > { %1727 = shalt.err (!%p1724_p4)
}
  0x21   : > { %s1728_s9 = scalar_lea.vmem %s221_s15, 512  ;;  %p1736_p9 = scmp.lt.s32.totalorder %s221_s15, %s221_s15 }
  0x22   : > { %p1729_p7 = scmp.ne.s32.totalorder %s221_s15, %s1728_s9  ;;  %p1737_p6 = scmp.lt.s32.totalorder %s1728_s9, %s1728_s9 }
  0x24   : > { %p1731_p8 = pnand %p1729_p7, %p1717_p0  ;;  %p1738_p5 = por %p1737_p6, %p1736_p9 }
  0x26   : > { %p1732_p11 = pneg %p1731_p8 }
  0x28   : > { %p1739_p10 = pnand %p1738_p5, %p1732_p11 }
  0x2a   : > { %1742 = shalt.err (!%p1739_p10)
}
  0x2b   : > { %s1845_s14 = smov 128   ;;  %s1846_s17 = smov 8  }
  0x2c   : > { %1480 = dma.hbm_to_vmem [thread:$0]  (!%p1954_p12), %s2272_s2, 512, %s221_s15, [#allocation3], %s1845_s14, %s1845_s14, %s1846_s17  }
  0x2d   : > { %s1743_s23 = scalar_lea.hbm %s2274_s4, 512 }
  0x2e   : > { %p1744_p13 = scmp.ne.s32.totalorder %s2274_s4, %s1743_s23  ;;  %p1750_p9 = scmp.lt.u32.totalorder %s1743_s23, %s2274_s4 }
  0x30   : > { %p1746_p5 = pnand %p1744_p13, %p1717_p0 }
  0x32   : > { %p1747_p6 = pneg %p1746_p5 }
  0x34   : > { %p1752_p10 = pnand %p1750_p9, %p1747_p6 }
  0x36   : > { %1755 = shalt.err (!%p1752_p10)
}
  0x37   : > { %s1756_s15 = scalar_lea.vmem %s1958_s18, 512  ;;  %p1764_p4 = scmp.lt.s32.totalorder %s1958_s18, %s1958_s18 }
  0x38   : > { %p1757_p1 = scmp.ne.s32.totalorder %s1958_s18, %s1756_s15  ;;  %p1765_p7 = scmp.lt.s32.totalorder %s1756_s15, %s1756_s15 }
  0x3a   : > { %p1759_p2 = pnand %p1757_p1, %p1717_p0  ;;  %p1766_p8 = por %p1765_p7, %p1764_p4 }
  0x3c   : > { %p1760_p3 = pneg %p1759_p2 }
  0x3e   : > { %p1767_p11 = pnand %p1766_p8, %p1760_p3 }
  0x40   : > { %1770 = shalt.err (!%p1767_p11)
}
  0x41   : > { %1483 = dma.hbm_to_vmem [thread:$0]  (!%p1954_p12), %s2274_s4, 512, %s1958_s18, [#allocation6], %s1845_s14, %s1845_s14, %s1846_s17  }
  0x42   : > { %p2286_p13 = scmp.ne.s32.totalorder %s2284_s13, 0 }
  0x43   : > { %p2287_p5 = scmp.eq.s32.totalorder (!%p2286_p13), %s1918_s28, 0 }
  0x44   : > { %266 = sbr.rel (%p2286_p13) target bundleno = 2873 (0xb39), region = 48 }
  0x4b   : > { %1816 = dma.done.wait (%p2287_p5), [#allocation3], 512   ;;  %p2288_p0 = pmov %p2287_p5 }
  0x4d   : > { %1818 = vsyncadd (%p2288_p0), [#allocation3], 4294966784  ;;  %p2289_p6 = pmov %p2288_p0 }
  0x4e   : > { %p2290_p9 = pmov %p2288_p0 }
  0x4f   : > { %1820 = dma.done.wait (%p2289_p6), [#allocation6], 512  }
  0x50   : > { %1822 = vsyncadd (%p2290_p9), [#allocation6], 4294966784  ;;  %p302_p10 = scmp.lt.s32.totalorder %s1918_s28, 1  ;;  %v309_v0 = vlaneseq  ;;  %s1847_s20 = smov 16   ;;  %v1848_v4 = vmov 0.0   ;;  %vm321_vm1 = vcmask 1047680  }
  0x51   : > { %s1849_s21 = smov 1   ;;  %s1850_s22 = smov 15   ;;  %v317_v25 = vld [vmem:[%s2271_s1] sm:$0xff]  ;;  %vm378_vm3 = vcmask 392192   ;;  %v318_v39 = vld [vmem:[%s2271_s1 + $0x8] sm:$0xff]  ;;  %v319_v40 = vld [vmem:[%s2271_s1 + $0x10] sm:$0xff] }
  0x52   : > { %s303_s16 = scalar_select %p302_p10, %s1918_s28, 1  ;;  %v310_v1 = vand.u32 127, %v309_v0  ;;  %1296 = vmatprep.mubr.msk.f32.mxu0 %vm378_vm3, %v317_v25  ;;  %v320_v41 = vld [vmem:[%s2271_s1 + $0x18] sm:$0xff]  ;;  %vm604_vm4 = vcmask 785408   ;;  %vm1855_vm5 = vmmov 0   ;;  %vm1101_vm6 = vcmask 130048  }
  0x53   : > { %s1851_s23 = smov 14   ;;  %s1852_s29 = smov 113  }
  0x54   : > { %s1228_s18 = sshll.u32 %s303_s16, 4  ;;  %vm314_vm0 = vcmp.ne.s32.totalorder %v310_v1, 15  ;;  %vm311_vm2 = vcmp.ne.s32.totalorder %v310_v1, 0  ;;  %s1225_s15 = sshll.u32 %s1918_s28, 7 }
  0x55   : > { %s306_s17 = scalar_lea.vmem %s2270_s0, %s1228_s18  ;;  %v1210_v5 = vsel %vm314_vm0, 1.0, %v1848_v4  ;;  %v1209_v11 = vsel %vm311_vm2, 1.0, %v1848_v4  ;;  %s2228_s13 = scalar_lea.hbm %s2277_s7, %s1225_s15 }
  0x56   : > { %v307_v2 = vld [vmem:[%s306_s17] sm:$0xff]  ;;  %v308_v3 = vld [vmem:[%s306_s17 + $0x8] sm:$0xff]  ;;  %p2291_p1 = scmp.ne.s32.totalorder %s2282_s11, 0  ;;  %s1856_s28 = smov [#allocation7]  }
  0x57   : > { %322 = vrot.lane.b32.xlu0 %v307_v2, %s1847_s20  ;;  %v1538_v6 = vpack.i.bf16 %v308_v3, %v307_v2 }
  0x5b   : > { %325 = vrot.lane.b32.xlu0 %v308_v3, %s1847_s20 }
  0x5f   : > { %341 = vrot.lane.b32.xlu0 %v1210_v5, %s1849_s21  ;;  %s1775_s21 = sshll.u32 %s1856_s28, 4  ;;  %s1776_s21 = int_to_ptr.vmem [resolvable:$false] %s1775_s21 }
  0x60   : > { %s1777_s8 = scalar_lea.vmem %s1776_s21, 256 }
  0x63   : > { %1539 = vrot.lane.b32.xlu0 %v1538_v6, %s1850_s22 }
  0xc9   : > { %v323_v7 = vpop.permute.xlu0 %322 }
  0xca   : > { %v324_v8 = vsel %vm321_vm1, %v323_v7, %v307_v2 }
  0xcb   : > { %328 = vrot.lane.b32.xlu1 %v324_v8, %s1847_s20 }
  0xcd   : > { %v326_v9 = vpop.permute.xlu0 %325 }
  0xce   : > { %v327_v10 = vsel %vm321_vm1, %v326_v9, %v308_v3 }
  0xcf   : > { %330 = vrot.lane.b32.xlu1 %v327_v10, %s1847_s20 }
  0xd1   : > { %v2032_v12 = vpop.permute.xlu0 %341 }
  0xd3   : > { %335 = vrot.lane.b32.xlu1 %v1209_v11, %s1850_s22 }
  0xd5   : > { %v1540_v15 = vpop.permute.xlu0 %1539 }
 0x13d   : > { %v329_v13 = vpop.permute.xlu1 %328 }
 0x13e   : > { %v332_v14 = vsel %vm321_vm1, %v329_v13, %v307_v2 }
 0x13f   : > { %v344_v19 = vmul.f32 %v2032_v12, %v332_v14 }
 0x141   : > { %v331_v16 = vpop.permute.xlu1 %330 }
 0x142   : > { %v333_v17 = vsel %vm321_vm1, %v331_v16, %v308_v3 }
 0x143   : > { %v345_v18 = vmul.f32 %v2032_v12, %v333_v17 }
 0x145   : > { %v2038_v20 = vpop.permute.xlu1 %335  ;;  %v1543_v21 = vpack.i.bf16 %v345_v18, %v344_v19 }
 0x146   : > { %v338_v22 = vmul.f32 %v2038_v20, %v332_v14  ;;  %v339_v23 = vmul.f32 %v2038_v20, %v333_v17 }
 0x147   : > { %1544 = vrot.lane.b32.xlu1 %v1543_v21, %s1851_s23 }
 0x148   : > { %v1548_v24 = vpack.i.bf16 %v339_v23, %v338_v22  ;;  %v480_v22 = vld [vmem:[#allocation2] sm:$0xff] }
 0x149   : > { %1326 = vmatprep.mubr.msk.f32.mxu1 %vm604_vm4, %v480_v22 }
 0x14a   : > { %1549 = vrot.lane.b32.xlu0 %v1548_v24, %s1852_s29 }
 0x14b   : > { %1554 = vrot.lane.b32.xlu1 %v1540_v15, %s1852_s29 }
 0x1b9   : > { %v1545_v26 = vpop.permute.xlu1 %1544 }
 0x1ba   : > { %1559 = vrot.lane.b32.xlu0 %v1545_v26, %s1852_s29 }
 0x1bc   : > { %v1550_v27 = vpop.permute.xlu0 %1549 }
 0x1bd   : > { %v1552_v28 = vunpack.i.h.bf16 %v1550_v27  ;;  %v1551_v29 = vunpack.i.l.bf16 %v1550_v27  ;;  %v1555_v30 = vpop.permute.xlu1 %1554 }
 0x1be   : > { %v1557_v31 = vunpack.i.h.bf16 %v1555_v30  ;;  %v1556_v32 = vunpack.i.l.bf16 %v1555_v30  ;;  %v540_v30 = vld [vmem:[%s2273_s3] sm:$0xff] }
 0x1bf   : > { %v1389_v33 = vpack.c.bf16 %v1552_v28, %v1551_v29 }
 0x1c0   : > { %v1393_v34 = vpack.c.bf16 %v1557_v31, %v1556_v32 }
 0x1c1   : > { %1390 = vmatprep.subr.bf16.mxu0 %v1389_v33 }
 0x1c2   : > { %1392 = vmatpush3.bf16.msra.mxu0 %v1389_v33 }
 0x1c3   : > { %1394 = vmatprep.subr.bf16.mxu0 %v1393_v34 }
 0x1c6   : > { %1396 = vmatpush3.bf16.msra.mxu0 %v1393_v34 }
 0x22c   : > { %v1560_v35 = vpop.permute.xlu0 %1559 }
 0x22d   : > { %v1562_v36 = vunpack.i.h.bf16 %v1560_v35  ;;  %v1561_v37 = vunpack.i.l.bf16 %v1560_v35  ;;  %v1853_v35 = vmov 0  }
 0x22e   : > { %1613 = vset.pattern.permute.xlu1 %v1853_v35  ;;  %1614 = vset.pattern.permute.xlu0 %v1853_v35 }
 0x22f   : > { %v1397_v38 = vpack.c.bf16 %v1562_v36, %v1561_v37  ;;  %v541_v36 = vld [vmem:[%s2273_s3 + $0x8] sm:$0xff] }
 0x231   : > { %1398 = vmatprep.subr.bf16.mxu0 %v1397_v38 }
 0x232   : > { %1400 = vmatpush3.bf16.msra.mxu0 %v1397_v38 }
 0x235   : > { %1297 = vmatmul.mubr.msk.f32.vlgmr.msra.gmra.mrb[0].mxu0 %vm378_vm3, %v318_v39  ;;  %v542_v39 = vld [vmem:[%s2273_s3 + $0x10] sm:$0xff] }
 0x236   : > { %1299 = vmatprep.mubr.msk.f32.mxu0 %vm378_vm3, %v319_v40 }
 0x239   : > { %1300 = vmatmul.mubr.msk.f32.gmra.mrb[2].mxu0 %vm378_vm3, %v320_v41 }
 0x308   : > { %v2062_v42 = vpop.f32.mrb[0].mxu0 }
 0x309   : > { %v477_v43 = vmax.f32 %v2062_v42, 0.0  ;;  %v2065_v44 = vpop.f32.mrb[1].mxu0 }
 0x30a   : > { %v476_v45 = vmax.f32 %v2065_v44, 0.0 }
 0x30b   : > { %487 = vrot.lane.b32.xlu0 %v477_v43, %s1847_s20 }
 0x30c   : > { %484 = vrot.lane.b32.xlu1 %v476_v45, %s1847_s20  ;;  %v2070_v46 = vpop.f32.mrb[2].mxu0  ;;  %v1563_v59 = vpack.i.bf16 %v477_v43, %v476_v45 }
 0x30d   : > { %v479_v47 = vmax.f32 %v2070_v46, 0.0  ;;  %v2073_v48 = vpop.f32.mrb[3].mxu0 }
 0x30e   : > { %v478_v49 = vmax.f32 %v2073_v48, 0.0 }
 0x30f   : > { %493 = vrot.lane.b32.xlu0 %v479_v47, %s1847_s20 }
 0x310   : > { %490 = vrot.lane.b32.xlu1 %v478_v49, %s1847_s20  ;;  %v1568_v58 = vpack.i.bf16 %v479_v47, %v478_v49 }
 0x37d   : > { %v488_v50 = vpop.permute.xlu0 %487 }
 0x37e   : > { %v485_v51 = vpop.permute.xlu1 %484  ;;  %v489_v52 = vsel %vm321_vm1, %v488_v50, %v477_v43 }
 0x37f   : > { %498 = vrot.lane.b32.xlu0 %v489_v52, %s1847_s20  ;;  %v486_v53 = vsel %vm321_vm1, %v485_v51, %v476_v45 }
 0x380   : > { %496 = vrot.lane.b32.xlu1 %v486_v53, %s1847_s20 }
 0x381   : > { %v494_v54 = vpop.permute.xlu0 %493 }
 0x382   : > { %v491_v55 = vpop.permute.xlu1 %490  ;;  %v495_v56 = vsel %vm321_vm1, %v494_v54, %v479_v47 }
 0x383   : > { %502 = vrot.lane.b32.xlu0 %v495_v56, %s1847_s20  ;;  %v492_v57 = vsel %vm321_vm1, %v491_v55, %v478_v49 }
 0x384   : > { %500 = vrot.lane.b32.xlu1 %v492_v57, %s1847_s20  ;;  %v481_v57 = vld [vmem:[#allocation2 + $0x8] sm:$0xff] }
 0x387   : > { %1569 = vrot.lane.b32.xlu0 %v1568_v58, %s1850_s22  ;;  %v482_v58 = vld [vmem:[#allocation2 + $0x10] sm:$0xff] }
 0x388   : > { %1564 = vrot.lane.b32.xlu1 %v1563_v59, %s1850_s22  ;;  %v483_v59 = vld [vmem:[#allocation2 + $0x18] sm:$0xff] }
 0x3f1   : > { %v499_v60 = vpop.permute.xlu0 %498 }
 0x3f2   : > { %v505_v61 = vsel %vm321_vm1, %v499_v60, %v477_v43  ;;  %v497_v62 = vpop.permute.xlu1 %496 }
 0x3f3   : > { %v513_v63 = vmul.f32 %v505_v61, %v2032_v12  ;;  %v504_v0 = vsel %vm321_vm1, %v497_v62, %v476_v45  ;;  %v509_v3 = vmul.f32 %v505_v61, %v2038_v20  ;;  %v543_v45 = vld [vmem:[%s2273_s3 + $0x18] sm:$0xff] }
 0x3f4   : > { %v512_v1 = vmul.f32 %v504_v0, %v2032_v12  ;;  %v508_v5 = vmul.f32 %v504_v0, %v2038_v20 }
 0x3f5   : > { %v503_v2 = vpop.permute.xlu0 %502 }
 0x3f6   : > { %v507_v6 = vsel %vm321_vm1, %v503_v2, %v479_v47  ;;  %v501_v7 = vpop.permute.xlu1 %500  ;;  %v1573_v8 = vpack.i.bf16 %v513_v63, %v512_v1  ;;  %v1583_v16 = vpack.i.bf16 %v509_v3, %v508_v5 }
 0x3f7   : > { %v515_v9 = vmul.f32 %v507_v6, %v2032_v12  ;;  %v506_v10 = vsel %vm321_vm1, %v501_v7, %v478_v49  ;;  %v511_v13 = vmul.f32 %v507_v6, %v2038_v20 }
 0x3f8   : > { %v514_v11 = vmul.f32 %v506_v10, %v2032_v12  ;;  %1574 = vrot.lane.b32.xlu1 %v1573_v8, %s1851_s23  ;;  %v510_v14 = vmul.f32 %v506_v10, %v2038_v20 }
 0x3f9   : > { %v1570_v18 = vpop.permute.xlu0 %1569 }
 0x3fa   : > { %v1565_v15 = vpop.permute.xlu1 %1564  ;;  %v1578_v17 = vpack.i.bf16 %v515_v9, %v514_v11  ;;  %v1588_v19 = vpack.i.bf16 %v511_v13, %v510_v14 }
 0x3fc   : > { %1584 = vrot.lane.b32.xlu1 %v1583_v16, %s1852_s29  ;;  %1579 = vrot.lane.b32.xlu0 %v1578_v17, %s1851_s23 }
 0x400   : > { %1589 = vrot.lane.b32.xlu0 %v1588_v19, %s1852_s29  ;;  %1594 = vrot.lane.b32.xlu1 %v1565_v15, %s1852_s29 }
 0x404   : > { %1599 = vrot.lane.b32.xlu0 %v1570_v18, %s1852_s29 }
 0x46a   : > { %v1575_v21 = vpop.permute.xlu1 %1574 }
 0x46b   : > { %1604 = vrot.lane.b32.xlu1 %v1575_v21, %s1852_s29 }
 0x46e   : > { %v1580_v23 = vpop.permute.xlu0 %1579  ;;  %v1585_v24 = vpop.permute.xlu1 %1584 }
 0x46f   : > { %v1587_v25 = vunpack.i.h.bf16 %v1585_v24  ;;  %v1586_v26 = vunpack.i.l.bf16 %v1585_v24  ;;  %1609 = vrot.lane.b32.xlu0 %v1580_v23, %s1852_s29  ;;  %546 = vperm.xlu1 %1613, %v540_v30  }
 0x471   : > { %v1401_v27 = vpack.c.bf16 %v1587_v25, %v1586_v26 }
 0x472   : > { %v1590_v28 = vpop.permute.xlu0 %1589  ;;  %v1595_v29 = vpop.permute.xlu1 %1594 }
 0x473   : > { %v1592_v31 = vunpack.i.h.bf16 %v1590_v28  ;;  %v1591_v32 = vunpack.i.l.bf16 %v1590_v28  ;;  %v1597_v33 = vunpack.i.h.bf16 %v1595_v29  ;;  %v1596_v34 = vunpack.i.l.bf16 %v1595_v29  ;;  %1402 = vmatprep.subr.bf16.mxu1 %v1401_v27  ;;  %551 = vperm.xlu0 %1614, %v541_v36  }
 0x474   : > { %1404 = vmatpush3.bf16.msra.mxu1 %v1401_v27  ;;  %556 = vperm.xlu1 %1613, %v542_v39  }
 0x475   : > { %v1405_v37 = vpack.c.bf16 %v1592_v31, %v1591_v32  ;;  %v1409_v40 = vpack.c.bf16 %v1597_v33, %v1596_v34 }
 0x476   : > { %v1600_v38 = vpop.permute.xlu0 %1599 }
 0x477   : > { %v1602_v41 = vunpack.i.h.bf16 %v1600_v38  ;;  %v1601_v43 = vunpack.i.l.bf16 %v1600_v38  ;;  %1406 = vmatprep.subr.bf16.mxu1 %v1405_v37 }
 0x478   : > { %1408 = vmatpush3.bf16.msra.mxu1 %v1405_v37  ;;  %561 = vperm.xlu1 %1613, %v543_v45  }
 0x479   : > { %1410 = vmatprep.subr.bf16.mxu1 %v1409_v40  ;;  %v1413_v47 = vpack.c.bf16 %v1602_v41, %v1601_v43 }
 0x47c   : > { %1412 = vmatpush3.bf16.msra.mxu1 %v1409_v40 }
 0x47d   : > { %1414 = vmatprep.subr.bf16.mxu1 %v1413_v47 }
 0x480   : > { %1416 = vmatpush3.bf16.msra.mxu1 %v1413_v47 }
 0x4dd   : > { %v1605_v49 = vpop.permute.xlu1 %1604 }
 0x4de   : > { %v1607_v50 = vunpack.i.h.bf16 %v1605_v49  ;;  %v1606_v51 = vunpack.i.l.bf16 %v1605_v49 }
 0x4e0   : > { %v1417_v52 = vpack.c.bf16 %v1607_v50, %v1606_v51 }
 0x4e1   : > { %v1610_v53 = vpop.permute.xlu0 %1609 }
 0x4e2   : > { %v1612_v54 = vunpack.i.h.bf16 %v1610_v53  ;;  %v1611_v55 = vunpack.i.l.bf16 %v1610_v53  ;;  %1418 = vmatprep.subr.bf16.mxu1 %v1417_v52 }
 0x4e3   : > { %1420 = vmatpush3.bf16.msra.mxu1 %v1417_v52  ;;  %v706_v52 = vld [vmem:[#allocation5] sm:$0xff] }
 0x4e4   : > { %v1421_v56 = vpack.c.bf16 %v1612_v54, %v1611_v55  ;;  %1356 = vmatprep.mubr.msk.f32.mxu0 %vm604_vm4, %v706_v52 }
 0x4e6   : > { %1422 = vmatprep.subr.bf16.mxu1 %v1421_v56 }
 0x4e7   : > { %1424 = vmatpush3.bf16.msra.mxu1 %v1421_v56 }
 0x4ea   : > { %1327 = vmatmul.mubr.msk.f32.vlgmr.msra.gmra.mrb[0].mxu1 %vm604_vm4, %v481_v57 }
 0x4eb   : > { %1329 = vmatprep.mubr.msk.f32.mxu1 %vm604_vm4, %v482_v58  ;;  %v766_v58 = vld [vmem:[%s2275_s5] sm:$0xff] }
 0x4ee   : > { %1330 = vmatmul.mubr.msk.f32.gmra.mrb[2].mxu1 %vm604_vm4, %v483_v59  ;;  %v547_v60 = vpop.permute.xlu1 %546 }
 0x4ef   : > { %1386 = vmatprep.mubr.msk.f32.mxu1 %vm1855_vm5, %v1848_v4 }
 0x4f2   : > { %v552_v62 = vpop.permute.xlu0 %551 }
 0x4f3   : > { %v557_v61 = vpop.permute.xlu1 %556 }
 0x4f7   : > { %v562_v5 = vpop.permute.xlu1 %561 }
 0x5bd   : > { %v1328_v63 = vpop.f32.mrb[0].mxu1 }
 0x5be   : > { %v689_v0 = vadd.f32 %v1328_v63, %v552_v62  ;;  %v683_v1 = vpop.f32.mrb[1].mxu1 }
 0x5bf   : > { %v684_v2 = vadd.f32 %v683_v1, %v547_v60  ;;  %v767_v1 = vld [vmem:[%s2275_s5 + $0x8] sm:$0xff] }
 0x5c0   : > { %v703_v3 = vmax.f32 %v689_v0, 0.0 }
 0x5c1   : > { %v702_v6 = vmax.f32 %v684_v2, 0.0  ;;  %v1331_v7 = vpop.f32.mrb[2].mxu1 }
 0x5c2   : > { %v699_v8 = vadd.f32 %v1331_v7, %v562_v5  ;;  %713 = vrot.lane.b32.xlu1 %v703_v3, %s1847_s20  ;;  %v693_v9 = vpop.f32.mrb[3].mxu1 }
 0x5c3   : > { %v694_v10 = vadd.f32 %v693_v9, %v557_v61  ;;  %710 = vrot.lane.b32.xlu0 %v702_v6, %s1847_s20  ;;  %v1615_v24 = vpack.i.bf16 %v703_v3, %v702_v6  ;;  %v769_v9 = vld [vmem:[%s2275_s5 + $0x18] sm:$0xff] }
 0x5c4   : > { %v705_v11 = vmax.f32 %v699_v8, 0.0 }
 0x5c5   : > { %v704_v13 = vmax.f32 %v694_v10, 0.0 }
 0x5c6   : > { %719 = vrot.lane.b32.xlu1 %v705_v11, %s1847_s20 }
 0x5c7   : > { %716 = vrot.lane.b32.xlu0 %v704_v13, %s1847_s20  ;;  %v1620_v23 = vpack.i.bf16 %v705_v11, %v704_v13 }
 0x634   : > { %v714_v14 = vpop.permute.xlu1 %713 }
 0x635   : > { %v711_v15 = vpop.permute.xlu0 %710  ;;  %v715_v16 = vsel %vm321_vm1, %v714_v14, %v703_v3 }
 0x636   : > { %724 = vrot.lane.b32.xlu1 %v715_v16, %s1847_s20  ;;  %v712_v17 = vsel %vm321_vm1, %v711_v15, %v702_v6 }
 0x637   : > { %722 = vrot.lane.b32.xlu0 %v712_v17, %s1847_s20 }
 0x638   : > { %v720_v18 = vpop.permute.xlu1 %719 }
 0x639   : > { %v717_v19 = vpop.permute.xlu0 %716  ;;  %v721_v21 = vsel %vm321_vm1, %v720_v18, %v705_v11 }
 0x63a   : > { %728 = vrot.lane.b32.xlu1 %v721_v21, %s1847_s20  ;;  %v718_v22 = vsel %vm321_vm1, %v717_v19, %v704_v13  ;;  %v707_v21 = vld [vmem:[#allocation5 + $0x8] sm:$0xff] }
 0x63b   : > { %726 = vrot.lane.b32.xlu0 %v718_v22, %s1847_s20  ;;  %v708_v22 = vld [vmem:[#allocation5 + $0x10] sm:$0xff] }
 0x63e   : > { %1621 = vrot.lane.b32.xlu1 %v1620_v23, %s1850_s22  ;;  %v709_v23 = vld [vmem:[#allocation5 + $0x18] sm:$0xff] }
 0x63f   : > { %1616 = vrot.lane.b32.xlu0 %v1615_v24, %s1850_s22 }
 0x6a8   : > { %v725_v25 = vpop.permute.xlu1 %724 }
 0x6a9   : > { %v731_v26 = vsel %vm321_vm1, %v725_v25, %v703_v3  ;;  %v723_v27 = vpop.permute.xlu0 %722  ;;  %v768_v3 = vld [vmem:[%s2275_s5 + $0x10] sm:$0xff] }
 0x6aa   : > { %v739_v28 = vmul.f32 %v731_v26, %v2032_v12  ;;  %v730_v29 = vsel %vm321_vm1, %v723_v27, %v702_v6  ;;  %v735_v32 = vmul.f32 %v731_v26, %v2038_v20 }
 0x6ab   : > { %v738_v30 = vmul.f32 %v730_v29, %v2032_v12  ;;  %v734_v33 = vmul.f32 %v730_v29, %v2038_v20 }
 0x6ac   : > { %v729_v31 = vpop.permute.xlu1 %728 }
 0x6ad   : > { %v733_v34 = vsel %vm321_vm1, %v729_v31, %v705_v11  ;;  %v727_v35 = vpop.permute.xlu0 %726  ;;  %v1625_v36 = vpack.i.bf16 %v739_v28, %v738_v30  ;;  %v1635_v45 = vpack.i.bf16 %v735_v32, %v734_v33 }
 0x6ae   : > { %v741_v37 = vmul.f32 %v733_v34, %v2032_v12  ;;  %v732_v38 = vsel %vm321_vm1, %v727_v35, %v704_v13  ;;  %v737_v40 = vmul.f32 %v733_v34, %v2038_v20 }
 0x6af   : > { %v740_v39 = vmul.f32 %v732_v38, %v2032_v12  ;;  %1626 = vrot.lane.b32.xlu0 %v1625_v36, %s1851_s23  ;;  %v736_v41 = vmul.f32 %v732_v38, %v2038_v20 }
 0x6b0   : > { %v1622_v49 = vpop.permute.xlu1 %1621 }
 0x6b1   : > { %v1617_v43 = vpop.permute.xlu0 %1616  ;;  %v1630_v47 = vpack.i.bf16 %v741_v37, %v740_v39  ;;  %v1640_v50 = vpack.i.bf16 %v737_v40, %v736_v41 }
 0x6b3   : > { %1636 = vrot.lane.b32.xlu0 %v1635_v45, %s1852_s29  ;;  %1631 = vrot.lane.b32.xlu1 %v1630_v47, %s1851_s23 }
 0x6b7   : > { %1641 = vrot.lane.b32.xlu1 %v1640_v50, %s1852_s29  ;;  %1646 = vrot.lane.b32.xlu0 %v1617_v43, %s1852_s29 }
 0x6bb   : > { %1651 = vrot.lane.b32.xlu1 %v1622_v49, %s1852_s29 }
 0x721   : > { %v1627_v51 = vpop.permute.xlu0 %1626 }
 0x722   : > { %1656 = vrot.lane.b32.xlu0 %v1627_v51, %s1852_s29 }
 0x725   : > { %v1632_v53 = vpop.permute.xlu1 %1631  ;;  %v1637_v54 = vpop.permute.xlu0 %1636 }
 0x726   : > { %v1639_v55 = vunpack.i.h.bf16 %v1637_v54  ;;  %v1638_v56 = vunpack.i.l.bf16 %v1637_v54  ;;  %1661 = vrot.lane.b32.xlu1 %v1632_v53, %s1852_s29  ;;  %772 = vperm.xlu0 %1614, %v766_v58   ;;  %v1854_v53 = vmov 0.0|0.0  }
 0x727   : > { %1449 = vmatprep.subr.bf16.mxu1 %v1854_v53 }
 0x728   : > { %v1425_v57 = vpack.c.bf16 %v1639_v55, %v1638_v56 }
 0x729   : > { %v1642_v59 = vpop.permute.xlu1 %1641  ;;  %v1647_v60 = vpop.permute.xlu0 %1646 }
 0x72a   : > { %v1644_v61 = vunpack.i.h.bf16 %v1642_v59  ;;  %v1643_v62 = vunpack.i.l.bf16 %v1642_v59  ;;  %v1649_v63 = vunpack.i.h.bf16 %v1647_v60  ;;  %v1648_v0 = vunpack.i.l.bf16 %v1647_v60  ;;  %1426 = vmatprep.subr.bf16.mxu0 %v1425_v57  ;;  %777 = vperm.xlu1 %1613, %v767_v1  }
 0x72b   : > { %1428 = vmatpush3.bf16.msra.mxu0 %v1425_v57  ;;  %782 = vperm.xlu0 %1614, %v768_v3  }
 0x72c   : > { %v1429_v2 = vpack.c.bf16 %v1644_v61, %v1643_v62  ;;  %v1433_v6 = vpack.c.bf16 %v1649_v63, %v1648_v0 }
 0x72d   : > { %v1652_v5 = vpop.permute.xlu1 %1651 }
 0x72e   : > { %v1654_v7 = vunpack.i.h.bf16 %v1652_v5  ;;  %v1653_v8 = vunpack.i.l.bf16 %v1652_v5  ;;  %1430 = vmatprep.subr.bf16.mxu0 %v1429_v2  ;;  %787 = vperm.xlu1 %1613, %v769_v9  }
 0x72f   : > { %1432 = vmatpush3.bf16.msra.mxu0 %v1429_v2 }
 0x730   : > { %1434 = vmatprep.subr.bf16.mxu0 %v1433_v6  ;;  %v1437_v10 = vpack.c.bf16 %v1654_v7, %v1653_v8 }
 0x733   : > { %1436 = vmatpush3.bf16.msra.mxu0 %v1433_v6 }
 0x734   : > { %1438 = vmatprep.subr.bf16.mxu0 %v1437_v10 }
 0x737   : > { %1440 = vmatpush3.bf16.msra.mxu0 %v1437_v10 }
 0x794   : > { %v1657_v11 = vpop.permute.xlu0 %1656 }
 0x795   : > { %v1659_v13 = vunpack.i.h.bf16 %v1657_v11  ;;  %v1658_v14 = vunpack.i.l.bf16 %v1657_v11 }
 0x797   : > { %v1441_v15 = vpack.c.bf16 %v1659_v13, %v1658_v14 }
 0x798   : > { %v1662_v16 = vpop.permute.xlu1 %1661 }
 0x799   : > { %v1664_v17 = vunpack.i.h.bf16 %v1662_v16  ;;  %v1663_v18 = vunpack.i.l.bf16 %v1662_v16  ;;  %1442 = vmatprep.subr.bf16.mxu0 %v1441_v15 }
 0x79a   : > { %1444 = vmatpush3.bf16.msra.mxu0 %v1441_v15 }
 0x79b   : > { %v1445_v19 = vpack.c.bf16 %v1664_v17, %v1663_v18 }
 0x79d   : > { %1446 = vmatprep.subr.bf16.mxu0 %v1445_v19 }
 0x79e   : > { %1448 = vmatpush3.bf16.msra.mxu0 %v1445_v19 }
 0x7a1   : > { %1357 = vmatmul.mubr.msk.f32.vlgmr.msra.gmra.mrb[4].mxu0 %vm604_vm4, %v707_v21 }
 0x7a2   : > { %1359 = vmatprep.mubr.msk.f32.mxu0 %vm604_vm4, %v708_v22 }
 0x7a5   : > { %1360 = vmatmul.mubr.msk.f32.gmra.mrb[6].mxu0 %vm604_vm4, %v709_v23  ;;  %v773_v25 = vpop.permute.xlu0 %772 }
 0x7a9   : > { %v778_v24 = vpop.permute.xlu1 %777 }
 0x7aa   : > { %v783_v34 = vpop.permute.xlu0 %782 }
 0x7ad   : > { %v788_v31 = vpop.permute.xlu1 %787 }
 0x874   : > { %v1358_v26 = vpop.f32.mrb[4].mxu0 }
 0x875   : > { %v914_v27 = vadd.f32 %v1358_v26, %v778_v24  ;;  %v908_v28 = vpop.f32.mrb[5].mxu0 }
 0x876   : > { %v909_v29 = vadd.f32 %v908_v28, %v773_v25 }
 0x877   : > { %v928_v30 = vadd.f32 %v2062_v42, %v914_v27 }
 0x878   : > { %v927_v32 = vadd.f32 %v909_v29, %v2065_v44  ;;  %v1361_v33 = vpop.f32.mrb[6].mxu0 }
 0x879   : > { %v924_v35 = vadd.f32 %v1361_v33, %v788_v31  ;;  %935 = vrot.lane.b32.xlu1 %v928_v30, %s1847_s20  ;;  %v918_v36 = vpop.f32.mrb[7].mxu0 }
 0x87a   : > { %v919_v37 = vadd.f32 %v918_v36, %v783_v34  ;;  %932 = vrot.lane.b32.xlu0 %v927_v32, %s1847_s20  ;;  %v1665_v49 = vpack.i.bf16 %v928_v30, %v927_v32 }
 0x87b   : > { %v930_v38 = vadd.f32 %v2070_v46, %v924_v35  ;;  %v931_v35 = vld [vmem:[%s2276_s6] sm:$0xff] }
 0x87c   : > { %v929_v39 = vadd.f32 %v919_v37, %v2073_v48 }
 0x87d   : > { %941 = vrot.lane.b32.xlu1 %v930_v38, %s1847_s20 }
 0x87e   : > { %938 = vrot.lane.b32.xlu0 %v929_v39, %s1847_s20  ;;  %v1670_v47 = vpack.i.bf16 %v930_v38, %v929_v39 }
 0x8eb   : > { %v936_v42 = vpop.permute.xlu1 %935 }
 0x8ec   : > { %v933_v40 = vpop.permute.xlu0 %932  ;;  %v937_v44 = vsel %vm321_vm1, %v936_v42, %v928_v30 }
 0x8ed   : > { %946 = vrot.lane.b32.xlu1 %v937_v44, %s1847_s20  ;;  %v934_v41 = vsel %vm321_vm1, %v933_v40, %v927_v32 }
 0x8ee   : > { %944 = vrot.lane.b32.xlu0 %v934_v41, %s1847_s20 }
 0x8ef   : > { %v942_v43 = vpop.permute.xlu1 %941 }
 0x8f0   : > { %v939_v45 = vpop.permute.xlu0 %938  ;;  %v943_v46 = vsel %vm321_vm1, %v942_v43, %v930_v38 }
 0x8f1   : > { %950 = vrot.lane.b32.xlu1 %v943_v46, %s1847_s20  ;;  %v940_v48 = vsel %vm321_vm1, %v939_v45, %v929_v39 }
 0x8f2   : > { %948 = vrot.lane.b32.xlu0 %v940_v48, %s1847_s20 }
 0x8f5   : > { %1671 = vrot.lane.b32.xlu1 %v1670_v47, %s1850_s22 }
 0x8f6   : > { %1666 = vrot.lane.b32.xlu0 %v1665_v49, %s1850_s22 }
 0x95f   : > { %v947_v50 = vpop.permute.xlu1 %946 }
 0x960   : > { %v953_v51 = vsel %vm321_vm1, %v947_v50, %v928_v30  ;;  %v945_v52 = vpop.permute.xlu0 %944 }
 0x961   : > { %v961_v54 = vmul.f32 %v953_v51, %v2032_v12  ;;  %v952_v55 = vsel %vm321_vm1, %v945_v52, %v927_v32  ;;  %v957_v58 = vmul.f32 %v953_v51, %v2038_v20 }
 0x962   : > { %v960_v56 = vmul.f32 %v952_v55, %v2032_v12  ;;  %v956_v59 = vmul.f32 %v952_v55, %v2038_v20 }
 0x963   : > { %v951_v57 = vpop.permute.xlu1 %950 }
 0x964   : > { %v955_v60 = vsel %vm321_vm1, %v951_v57, %v930_v38  ;;  %v949_v61 = vpop.permute.xlu0 %948  ;;  %v1675_v62 = vpack.i.bf16 %v961_v54, %v960_v56  ;;  %v1685_v6 = vpack.i.bf16 %v957_v58, %v956_v59 }
 0x965   : > { %v963_v63 = vmul.f32 %v955_v60, %v2032_v12  ;;  %v954_v0 = vsel %vm321_vm1, %v949_v61, %v929_v39  ;;  %v959_v2 = vmul.f32 %v955_v60, %v2038_v20 }
 0x966   : > { %v962_v1 = vmul.f32 %v954_v0, %v2032_v12  ;;  %1676 = vrot.lane.b32.xlu0 %v1675_v62, %s1851_s23  ;;  %v958_v3 = vmul.f32 %v954_v0, %v2038_v20 }
 0x967   : > { %v1672_v8 = vpop.permute.xlu1 %1671 }
 0x968   : > { %v1667_v5 = vpop.permute.xlu0 %1666  ;;  %v1680_v7 = vpack.i.bf16 %v963_v63, %v962_v1  ;;  %v1690_v9 = vpack.i.bf16 %v959_v2, %v958_v3 }
 0x96a   : > { %1686 = vrot.lane.b32.xlu0 %v1685_v6, %s1852_s29  ;;  %1681 = vrot.lane.b32.xlu1 %v1680_v7, %s1851_s23  ;;  %s299_s23 = sand.u32 1, %s1833_s25  }
 0x96b   : > { %s1104_s14 = scalar_lea.sflag [#allocation4], %s299_s23 }
 0x96e   : > { %1691 = vrot.lane.b32.xlu1 %v1690_v9, %s1852_s29  ;;  %1696 = vrot.lane.b32.xlu0 %v1667_v5, %s1852_s29 }
 0x972   : > { %1701 = vrot.lane.b32.xlu1 %v1672_v8, %s1852_s29 }
 0x9d8   : > { %v1677_v12 = vpop.permute.xlu0 %1676 }
 0x9d9   : > { %1706 = vrot.lane.b32.xlu0 %v1677_v12, %s1852_s29 }
 0x9dc   : > { %v1682_v20 = vpop.permute.xlu1 %1681  ;;  %v1687_v10 = vpop.permute.xlu0 %1686 }
 0x9dd   : > { %v1689_v11 = vunpack.i.h.bf16 %v1687_v10  ;;  %v1688_v13 = vunpack.i.l.bf16 %v1687_v10  ;;  %1711 = vrot.lane.b32.xlu1 %v1682_v20, %s1852_s29  ;;  %s1206_s29 = sshll.u32 %s299_s23, 3 }
 0x9de   : > { %s301_s10 = scalar_lea.vmem [#allocation7], %s1206_s29 }
 0x9df   : > { %v1450_v14 = vpack.c.bf16 %v1689_v11, %v1688_v13  ;;  %s1117_s19 = sshll.u32 %s301_s10, 4  ;;  %s2230_s19 = int_to_ptr.vmem [resolvable:$true] %s1117_s19 }
 0x9e0   : > { %v1692_v15 = vpop.permute.xlu1 %1691  ;;  %v1697_v16 = vpop.permute.xlu0 %1696  ;;  %s1771_s17 = scalar_lea.vmem %s2230_s19, 128  ;;  %p1778_p4 = scmp.lt.s32.totalorder %s2230_s19, %s1776_s21 }
 0x9e1   : > { %v1694_v17 = vunpack.i.h.bf16 %v1692_v15  ;;  %v1693_v18 = vunpack.i.l.bf16 %v1692_v15  ;;  %1451 = vmatpush3.bf16.msra.mxu1 %v1450_v14  ;;  %v1699_v21 = vunpack.i.h.bf16 %v1697_v16  ;;  %v1698_v22 = vunpack.i.l.bf16 %v1697_v16  ;;  %p1772_p12 = scmp.ne.s32.totalorder %s2230_s19, %s1771_s17  ;;  %p1779_p7 = scmp.lt.s32.totalorder %s1777_s8, %s1771_s17 }
 0x9e2   : > { %1452 = vmatprep.subr.bf16.mxu1 %v1854_v53 }
 0x9e3   : > { %v1453_v19 = vpack.c.bf16 %v1694_v17, %v1693_v18  ;;  %v1456_v23 = vpack.c.bf16 %v1699_v21, %v1698_v22  ;;  %p1773_p2 = pnand %p1772_p12, %p2291_p1  ;;  %p1780_p8 = por %p1779_p7, %p1778_p4 }
 0x9e4   : > { %v1702_v4 = vpop.permute.xlu1 %1701 }
 0x9e5   : > { %1454 = vmatpush3.bf16.msra.mxu1 %v1453_v19  ;;  %v1704_v24 = vunpack.i.h.bf16 %v1702_v4  ;;  %v1703_v25 = vunpack.i.l.bf16 %v1702_v4  ;;  %p1774_p3 = pneg %p1773_p2 }
 0x9e6   : > { %1455 = vmatprep.subr.bf16.mxu1 %v1854_v53 }
 0x9e7   : > { %v1459_v26 = vpack.c.bf16 %v1704_v24, %v1703_v25  ;;  %p1781_p11 = pnand %p1780_p8, %p1774_p3 }
 0x9e9   : > { %1457 = vmatpush3.bf16.msra.mxu1 %v1456_v23 }
 0x9ea   : > { %1458 = vmatprep.subr.bf16.mxu1 %v1854_v53 }
 0x9ed   : > { %1460 = vmatpush3.bf16.msra.mxu1 %v1459_v26 }
 0x9ee   : > { %1461 = vmatprep.subr.bf16.mxu1 %v1854_v53 }
 0xa4b   : > { %v1707_v27 = vpop.permute.xlu0 %1706 }
 0xa4c   : > { %v1709_v28 = vunpack.i.h.bf16 %v1707_v27  ;;  %v1708_v29 = vunpack.i.l.bf16 %v1707_v27 }
 0xa4e   : > { %v1462_v30 = vpack.c.bf16 %v1709_v28, %v1708_v29 }
 0xa4f   : > { %v1712_v31 = vpop.permute.xlu1 %1711 }
 0xa50   : > { %v1714_v32 = vunpack.i.h.bf16 %v1712_v31  ;;  %v1713_v33 = vunpack.i.l.bf16 %v1712_v31  ;;  %1463 = vmatpush3.bf16.msra.mxu1 %v1462_v30 }
 0xa51   : > { %1464 = vmatprep.subr.bf16.mxu1 %v1854_v53 }
 0xa52   : > { %v1465_v34 = vpack.c.bf16 %v1714_v32, %v1713_v33 }
 0xa54   : > { %1466 = vmatpush3.bf16.msra.mxu1 %v1465_v34 }
 0xa57   : > { %1387 = vmatmul.mubr.msk.f32.vlgmr.msra.gmra.mrb[4].mxu1 %vm604_vm4, %v931_v35 }
 0xb2a   : > { %v1097_v36 = vpop.f32.mrb[4].mxu1 }
 0xb2b   : > { %1102 = vst.msk [vmem:[%s301_s10] sm:$0xff] %vm1101_vm6, %v1097_v36  ;;  %v1388_v37 = vpop.f32.mrb[5].mxu1 }
 0xb2c   : > { %1784 = shalt.err (!%p1781_p11)
}
 0xb2d   : > { %s1785_s9 = scalar_lea.hbm %s2228_s13, 128  ;;  %s1789_s23 = scalar_lea.hbm %s2277_s7, 256 }
 0xb2e   : > { %p1786_p13 = scmp.ne.s32.totalorder %s2228_s13, %s1785_s9  ;;  %p1790_p6 = scmp.lt.u32.totalorder %s2228_s13, %s2277_s7 }
 0xb2f   : > { %p1791_p9 = scmp.lt.u32.totalorder %s1789_s23, %s1785_s9  ;;  %p1793_p12 = scmp.lt.u32.totalorder %s1785_s9, %s2228_s13 }
 0xb30   : > { %p1787_p5 = pnand %p1786_p13, %p2291_p1 }
 0xb31   : > { %p1792_p10 = por %p1791_p9, %p1790_p6 }
 0xb32   : > { %p1788_p0 = pneg %p1787_p5 }
 0xb33   : > { %p1794_p2 = por %p1793_p12, %p1792_p10 }
 0xb35   : > { %p1795_p3 = pnand %p1794_p2, %p1788_p0 }
 0xb37   : > { %1798 = shalt.err (!%p1795_p3)
}
 0xb38   : > { %1475 = dma.vmem_to_hbm [thread:$0]  (%p2291_p1), %s2230_s19, 128, %s2228_s13, %s1104_s14  }
 0xb39 PF: > { %p1492_p4 = scmp.ge.s32.totalorder %s1841_s27, 2  ;;  %s1129_s10 = sand.u32 1, %s1829_s24  }
 0xb3a   : > { %p2292_p7 = scmp.ne.s32.totalorder %s2283_s12, 0  ;;  %s1130_s16 = scalar_lea.sflag [#allocation4], %s1129_s10 }
 0xb3c   : > { %p1485_p8 = pnand %p1492_p4, %p2292_p7 }
 0xb3e   : > { %1824 = dma.done.wait (!%p1485_p8), %s1130_s16, 128  }
 0xb3f   : > { %1826 = vsyncadd (!%p1485_p8), %s1130_s16, 4294967168  ;;  %s2293_s18 = sld [smem:[#allocation11_spill]]  ;;  %p19_p11 = scmp.ge.s32.totalorder %s1922_s30, 4  }
 0xb40   : > { %s2294_s24 = smov %s1833_s25  ;;  %s2295_s25 = smov %s1837_s26 }
 0xb41   : > { %s2297_s27 = smov %s1922_s30  ;;  %21 = sbr.rel (!%p19_p11) target bundleno = 5 (0x5), region = 92 }
 0xb45   : > { %s2296_s26 = smov %s2293_s18 }
 0xb48   :  { %1135 = vsyncpa [#allocation3], 1 }
 0xb49   :  { %1137 = vsyncpa [#allocation3 + $0x1], 1 }
 0xb4a   :  { %1138 = vsyncpa [#allocation6], 1 }
 0xb4b   :  { %1139 = vsyncpa [#allocation4], 1 }
 0xb4c   :  { %1141 = vsyncpa [#allocation4 + $0x1], 1 }

</bundles_post_ra>
